<compile_context>
chip_gen: v6e
topology: v6e:2x2x1
jax: 0.10.0
libtpu: 0.0.40
codegen_flags: <defaults>
</compile_context>

<pallas_src>
import jax
import jax.numpy as jnp
from jax.experimental import pallas as pl
from jax.experimental.pallas import tpu as pltpu


def _round_up(x, m):
    return ((x + m - 1) // m) * m


def _make_mahalanobis_kernel(C, C_sub, F_pad, bblk):
    """Kernel factory closing over static sizes (real C, sublane-padded C, padded F)."""

    def kernel(xf_ref, u_ref, a_ref, mask_ref):
        xf = xf_ref[...]                                   # (bblk, C_sub, F_pad) f32
        A = a_ref[...]                                     # (F_pad, F_pad) f32
        u = u_ref[...]                                     # (bblk, C_sub, C_sub) f32

        # Z[b, x] = A @ xf[b, x]: one MXU matmul over all bblk*C_sub rows.
        # bf16 inputs + f32 accumulation (the projection is not the
        # cancellation-sensitive step).
        z2d = jax.lax.dot_general(
            xf.reshape(bblk * C_sub, F_pad).astype(jnp.bfloat16),
            A.astype(jnp.bfloat16),
            dimension_numbers=(((1,), (1,)), ((), ())),
            preferred_element_type=jnp.float32)
        Z = z2d.reshape(bblk, C_sub, F_pad)                # (bblk, C_sub, F_pad) f32

        # Batched Gram G[b] = Z[b] @ Z[b]^T, kept in f32 (sq + sq^T - 2G below).
        G = jax.lax.dot_general(
            Z, Z, dimension_numbers=(((2,), (2,)), ((0,), (0,))),
            preferred_element_type=jnp.float32)            # (bblk, C_sub, C_sub)

        # diag(G) taken directly from Z (no eye-masked cross-lane reductions).
        sq = jnp.sum(Z * Z, axis=-1, keepdims=True)        # (bblk, C_sub, 1)
        # dist[b,x,c] = ||A (xf[b,x] - xf[b,c])||^2  (>= 0 by construction)
        dist = jnp.maximum(sq + jnp.swapaxes(sq, 1, 2) - 2.0 * G, 0.0)

        # Iota-based diagonal / valid-off-diagonal masks (broadcast over batch).
        row = jax.lax.broadcasted_iota(jnp.int32, (1, C_sub, C_sub), 1)
        col = jax.lax.broadcasted_iota(jnp.int32, (1, C_sub, C_sub), 2)
        diag = row == col
        off_valid = (row != col) & (row < C) & (col < C)   # real off-diagonal entries

        # p = 0.99 * exp_dist / max_c(exp_dist) off-diagonal, 0.99 on the diagonal.
        exp_dist = jnp.where(off_valid, 1.0 / (dist + 1e-10), 0.0)
        exp_max = jnp.max(exp_dist, axis=-1, keepdims=True)
        exp_max = jnp.maximum(exp_max, 1e-30)              # guard C==1 / padded rows
        p = exp_dist / exp_max
        p = jnp.where(diag, 1.0, p) * 0.99

        # Gumbel-softmax(hard=True) over logits [log(p/(1-p)), log((1-p)/p)]:
        # class 0 wins  <=>  2*log(p/(1-p)) + log(u/(1-u)) >= 0
        #               <=>  p*p*u >= (1-p)*(1-p)*(1-u)      (no logs needed)
        q = 1.0 - p
        sample = (p * p) * u >= (q * q) * (1.0 - u)
        mask_ref[...] = sample.astype(mask_ref.dtype)

    return kernel


def mahalanobis_mask_forward(X, A, key, *, max_batch_block=64,
                             vmem_budget_bytes=24 * 1024 * 1024):
    """Forward pass. X: (B, C, L) float32; A: (F, F) float32, F = L//2 + 1.

    Returns the hard {0,1} attention mask of shape (B, 1, C, C).
    """
    B, C, L = X.shape
    F_ = L // 2 + 1
    assert A.shape == (F_, F_)

    # TODO(synk): rfft has no Pallas equivalent; computed with XLA's FFT here.
    XF = jnp.abs(jnp.fft.rfft(X, axis=-1)).astype(jnp.float32)       # (B, C, F_)

    # Padding: C only to the f32 sublane multiple (8); F (a true lane /
    # contraction dim) to 128.  The mask's last dim stays C_sub — the block
    # equals the full array dim, which the (8,128) block rule allows.
    C_sub = _round_up(C, 8)
    F_pad = _round_up(F_, 128)

    # Batch block: amortize the ~0.35us/step grid overhead while keeping the
    # resident working set (double-buffered in/out + ~8 live f32 temps) inside
    # a conservative VMEM budget (safe on v7x's 64 MiB physical VMEM).
    per_batch_bytes = 4 * (3 * C_sub * F_pad + 12 * C_sub * C_sub)
    bblk = max(1, min(B, max_batch_block, vmem_budget_bytes // per_batch_bytes))
    if B >= 2:
        # At least 2 grid steps: lets v7x's two TensorCores split the batch and
        # restores input/output DMA pipelining on every generation.
        bblk = min(bblk, pl.cdiv(B, 2))
    bblk = int(bblk)
    B_pad = _round_up(B, bblk)
    num_blocks = B_pad // bblk

    XF_pad = jnp.pad(XF, ((0, B_pad - B), (0, C_sub - C), (0, F_pad - F_)))
    A_pad = jnp.pad(A.astype(jnp.float32), ((0, F_pad - F_), (0, F_pad - F_)))

    # Uniform noise for the Gumbel-softmax resampling, drawn host-side.
    # TODO(synk): pltpu.prng_seed/prng_random_bits would avoid this input but has
    # no CPU/interpret lowering; host-side jax.random keeps the kernel portable.
    u = jax.random.uniform(key, (B_pad, C_sub, C_sub), dtype=jnp.float32)

    kernel = _make_mahalanobis_kernel(C, C_sub, F_pad, bblk)

    out = pl.pallas_call(
        kernel,
        out_shape=jax.ShapeDtypeStruct((B_pad, C_sub, C_sub), jnp.float32),
        grid_spec=pltpu.PrefetchScalarGridSpec(
            num_scalar_prefetch=0,
            grid=(num_blocks,),
            in_specs=[
                pl.BlockSpec((bblk, C_sub, F_pad), lambda b: (b, 0, 0)),
                pl.BlockSpec((bblk, C_sub, C_sub), lambda b: (b, 0, 0)),
                pl.BlockSpec((F_pad, F_pad), lambda b: (0, 0)),
            ],
            out_specs=pl.BlockSpec((bblk, C_sub, C_sub), lambda b: (b, 0, 0)),
        ),
        compiler_params=pltpu.CompilerParams(
            dimension_semantics=("parallel",),
            vmem_limit_bytes=48 * 1024 * 1024),
    )(XF_pad, u, A_pad)

    # Strip padding and insert the singleton head axis (free layout plumbing).
    mask = out[:B, :C, :C][:, None, :, :]
    return mask


if __name__ == "__main__":
    key = jax.random.PRNGKey(0)
    k_x, k_a, k_g = jax.random.split(key, 3)

    B, C, L = 2, 4, 16                 # batch, channels/series, seq length
    F_ = L // 2 + 1                    # frequency_size = input_size // 2 + 1

    X = jax.random.normal(k_x, (B, C, L), dtype=jnp.float32)
    # nn.Parameter(torch.randn(frequency_size, frequency_size)) -- deterministic init
    A = jax.random.normal(k_a, (F_, F_), dtype=jnp.float32)

    mask = mahalanobis_mask_forward(X, A, k_g)
    mask = jax.block_until_ready(mask)

    assert mask.shape == (B, 1, C, C)
    assert mask.dtype == jnp.float32
    # values are hard {0, 1} samples
    assert bool(jnp.all((mask == 0.0) | (mask == 1.0)))

    print("KERNEL_OK")
</pallas_src>

<mosaic_0001>
module attributes {stable_mosaic.version = 11 : i64} {
  func.func @kernel(%arg0: i32, %arg1: memref<1x8x128xf32, #tpu.memory_space<vmem>>, %arg2: memref<1x8x8xf32, #tpu.memory_space<vmem>>, %arg3: memref<128x128xf32, #tpu.memory_space<vmem>>, %arg4: memref<1x8x8xf32, #tpu.memory_space<vmem>>) attributes {dimension_semantics = [#tpu.dimension_semantics<parallel>], iteration_bounds = array<i64: 2>, scalar_prefetch = 0 : i64, scratch_operands = 0 : i64, tpu.core_type = #tpu.core_type<tc>, window_params = [{transform_indices = @transform_0, window_bounds = array<i64: 1, 8, 128>}, {transform_indices = @transform_1, window_bounds = array<i64: 1, 8, 8>}, {pipeline_mode = #tpu.pipeline_mode<synchronous>, transform_indices = @transform_2, window_bounds = array<i64: 128, 128>}, {transform_indices = @transform_3, window_bounds = array<i64: 1, 8, 8>}]} {
    %c0 = arith.constant 0 : index
    %c0_0 = arith.constant 0 : index
    %c0_1 = arith.constant 0 : index
    %0 = vector.load %arg1[%c0, %c0_0, %c0_1] : memref<1x8x128xf32, #tpu.memory_space<vmem>>, vector<1x8x128xf32>
    %c0_2 = arith.constant 0 : index
    %c0_3 = arith.constant 0 : index
    %1 = vector.load %arg3[%c0_2, %c0_3] : memref<128x128xf32, #tpu.memory_space<vmem>>, vector<128x128xf32>
    %c0_4 = arith.constant 0 : index
    %c0_5 = arith.constant 0 : index
    %c0_6 = arith.constant 0 : index
    %2 = vector.load %arg2[%c0_4, %c0_5, %c0_6] : memref<1x8x8xf32, #tpu.memory_space<vmem>>, vector<1x8x8xf32>
    %3 = vector.shape_cast %0 : vector<1x8x128xf32> to vector<8x128xf32>
    %4 = arith.truncf %3 : vector<8x128xf32> to vector<8x128xbf16>
    %5 = arith.truncf %1 : vector<128x128xf32> to vector<128x128xbf16>
    %cst = arith.constant dense<0.000000e+00> : vector<8x128xf32>
    %6 = tpu.matmul %4, %5, %cst {dimension_numbers = #tpu.dot_dimension_numbers<[1], [1], [0], [0], [0, 0, 1, 0], [], []>} : vector<8x128xbf16>, vector<128x128xbf16>, vector<8x128xf32> -> vector<8x128xf32>
    %7 = vector.shape_cast %6 : vector<8x128xf32> to vector<1x8x128xf32>
    %cst_7 = arith.constant dense<0.000000e+00> : vector<1x8x8xf32>
    %8 = tpu.matmul %7, %7, %cst_7 {dimension_numbers = #tpu.dot_dimension_numbers<[2], [2], [1], [1], [0, 0, 0, 1, 1, 1], [0], [0]>} : vector<1x8x128xf32>, vector<1x8x128xf32>, vector<1x8x8xf32> -> vector<1x8x8xf32>
    %9 = arith.mulf %7, %7 : vector<1x8x128xf32>
    %cst_8 = arith.constant dense<0.000000e+00> : vector<1x8xf32>
    %10 = vector.multi_reduction <add>, %9, %cst_8 [2] : vector<1x8x128xf32> to vector<1x8xf32>
    %11 = vector.shape_cast %10 : vector<1x8xf32> to vector<1x8x1xf32>
    %12 = tpu.transpose %11, [0, 2, 1] : vector<1x8x1xf32> -> vector<1x1x8xf32>
    %13 = vector.broadcast %11 : vector<1x8x1xf32> to vector<1x8x8xf32>
    %14 = vector.broadcast %12 : vector<1x1x8xf32> to vector<1x8x8xf32>
    %15 = arith.addf %13, %14 : vector<1x8x8xf32>
    %cst_9 = arith.constant 2.000000e+00 : f32
    %16 = vector.broadcast %cst_9 : f32 to vector<1x8x8xf32>
    %17 = arith.mulf %16, %8 : vector<1x8x8xf32>
    %18 = arith.subf %15, %17 : vector<1x8x8xf32>
    %cst_10 = arith.constant 0.000000e+00 : f32
    %19 = vector.broadcast %cst_10 : f32 to vector<1x8x8xf32>
    %20 = arith.maximumf %18, %19 : vector<1x8x8xf32>
    %21 = tpu.iota {dimensions = array<i32: 1>} : vector<1x8x8xi32>
    %22 = tpu.iota {dimensions = array<i32: 2>} : vector<1x8x8xi32>
    %23 = arith.cmpi eq, %21, %22 : vector<1x8x8xi32>
    %24 = arith.cmpi ne, %21, %22 : vector<1x8x8xi32>
    %c4_i32 = arith.constant 4 : i32
    %25 = vector.broadcast %c4_i32 : i32 to vector<1x8x8xi32>
    %26 = arith.cmpi slt, %21, %25 : vector<1x8x8xi32>
    %27 = arith.andi %24, %26 : vector<1x8x8xi1>
    %c4_i32_11 = arith.constant 4 : i32
    %28 = vector.broadcast %c4_i32_11 : i32 to vector<1x8x8xi32>
    %29 = arith.cmpi slt, %22, %28 : vector<1x8x8xi32>
    %30 = arith.andi %27, %29 : vector<1x8x8xi1>
    %cst_12 = arith.constant 1.000000e-10 : f32
    %31 = vector.broadcast %cst_12 : f32 to vector<1x8x8xf32>
    %32 = arith.addf %20, %31 : vector<1x8x8xf32>
    %cst_13 = arith.constant 1.000000e+00 : f32
    %33 = vector.broadcast %cst_13 : f32 to vector<1x8x8xf32>
    %34 = arith.divf %33, %32 : vector<1x8x8xf32>
    %cst_14 = arith.constant 0.000000e+00 : f32
    %35 = vector.broadcast %cst_14 : f32 to vector<1x8x8xf32>
    %36 = arith.select %30, %34, %35 : vector<1x8x8xi1>, vector<1x8x8xf32>
    %cst_15 = arith.constant dense<0xFF800000> : vector<1x8xf32>
    %37 = vector.multi_reduction <maximumf>, %36, %cst_15 [2] : vector<1x8x8xf32> to vector<1x8xf32>
    %38 = vector.shape_cast %37 : vector<1x8xf32> to vector<1x8x1xf32>
    %cst_16 = arith.constant 1.000000e-30 : f32
    %39 = vector.broadcast %cst_16 : f32 to vector<1x8x1xf32>
    %40 = arith.maximumf %38, %39 : vector<1x8x1xf32>
    %41 = vector.broadcast %40 : vector<1x8x1xf32> to vector<1x8x8xf32>
    %42 = arith.divf %36, %41 : vector<1x8x8xf32>
    %cst_17 = arith.constant 1.000000e+00 : f32
    %43 = vector.broadcast %cst_17 : f32 to vector<1x8x8xf32>
    %44 = arith.select %23, %43, %42 : vector<1x8x8xi1>, vector<1x8x8xf32>
    %cst_18 = arith.constant 9.900000e-01 : f32
    %45 = vector.broadcast %cst_18 : f32 to vector<1x8x8xf32>
    %46 = arith.mulf %44, %45 : vector<1x8x8xf32>
    %cst_19 = arith.constant 1.000000e+00 : f32
    %47 = vector.broadcast %cst_19 : f32 to vector<1x8x8xf32>
    %48 = arith.subf %47, %46 : vector<1x8x8xf32>
    %49 = arith.mulf %46, %46 : vector<1x8x8xf32>
    %50 = arith.mulf %49, %2 : vector<1x8x8xf32>
    %51 = arith.mulf %48, %48 : vector<1x8x8xf32>
    %cst_20 = arith.constant 1.000000e+00 : f32
    %52 = vector.broadcast %cst_20 : f32 to vector<1x8x8xf32>
    %53 = arith.subf %52, %2 : vector<1x8x8xf32>
    %54 = arith.mulf %51, %53 : vector<1x8x8xf32>
    %55 = arith.cmpf oge, %50, %54 : vector<1x8x8xf32>
    %56 = arith.extui %55 : vector<1x8x8xi1> to vector<1x8x8xi32>
    %57 = arith.sitofp %56 : vector<1x8x8xi32> to vector<1x8x8xf32>
    %c0_21 = arith.constant 0 : index
    %c0_22 = arith.constant 0 : index
    %c0_23 = arith.constant 0 : index
    %58 = vector.load %arg4[%c0_21, %c0_22, %c0_23] : memref<1x8x8xf32, #tpu.memory_space<vmem>>, vector<1x8x8xf32>
    tpu.vector_store %arg4[%c0_21, %c0_22, %c0_23], %57 {strides = array<i32>} : memref<1x8x8xf32, #tpu.memory_space<vmem>>, vector<1x8x8xf32>,
    return
  }
  func.func @transform_0(%arg0: i32) -> (i32, i32, i32) {
    %c0_i32 = arith.constant 0 : i32
    %c0_i32_0 = arith.constant 0 : i32
    %c0_i32_1 = arith.constant 0 : i32
    return %arg0, %c0_i32, %c0_i32_0 : i32, i32, i32
  }
  func.func @transform_1(%arg0: i32) -> (i32, i32, i32) {
    %c0_i32 = arith.constant 0 : i32
    %c0_i32_0 = arith.constant 0 : i32
    %c0_i32_1 = arith.constant 0 : i32
    return %arg0, %c0_i32, %c0_i32_0 : i32, i32, i32
  }
  func.func @transform_2(%arg0: i32) -> (i32, i32) {
    %c0_i32 = arith.constant 0 : i32
    %c0_i32_0 = arith.constant 0 : i32
    %c0_i32_1 = arith.constant 0 : i32
    return %c0_i32, %c0_i32_0 : i32, i32
  }
  func.func @transform_3(%arg0: i32) -> (i32, i32, i32) {
    %c0_i32 = arith.constant 0 : i32
    %c0_i32_0 = arith.constant 0 : i32
    %c0_i32_1 = arith.constant 0 : i32
    return %arg0, %c0_i32, %c0_i32_0 : i32, i32, i32
  }
}

</mosaic_0001>

<bundles_post_ra>
// kernel: tpu_custom_call.1
= control target key start
LH: loop header
LB: loop body
LE: loop exit
PB: predicated region body
PF: predicated region fallthrough
CT: control target
= control target key end

     0   :  { %8 = vsyncpa [#allocation3], 0  ;;  %s1097_s0 = inlined_call_operand.hbm [shape: f32[2,8,128], index: 0, kind: input, shape index: {}]   ;;  %s1098_s1 = inlined_call_operand.hbm [shape: f32[2,8,8], index: 1, kind: input, shape index: {}]   ;;  %s1099_s2 = inlined_call_operand.hbm [shape: f32[128,128], index: 2, kind: input, shape index: {}]   ;;  %s1100_s3 = inlined_call_operand.hbm [shape: f32[2,8,8], index: 3, kind: output, shape index: {}]  }
   0x1   :  { %10 = vsyncpa [#allocation3 + $0x1], 0 }
   0x2   :  { %11 = vsyncpa [#allocation6], 0 }
   0x3   :  { %13 = vsyncpa [#allocation6 + $0x1], 0 }
   0x4   :  { %14 = vsyncpa [#allocation4], 0 }
   0x5   :  { %16 = vsyncpa [#allocation4 + $0x1], 0  ;;  %s875_s12 = smov 0   ;;  %s877_s13 = smov 0  }
   0x6   :  { %s879_s14 = smov 0   ;;  %s881_s15 = smov 0  }
   0x7 LB: > { %s896_s16 = sadd.s32 4294967295, %s845_s15   ;;  %s567_s17 = sadd.s32 4294967294, %s845_s15   ;;  %s845_s15 = sphi %s881_s15, %s1122_s15   ;;  %s841_s14 = sphi %s879_s14, %s1121_s14   ;;  %s837_s13 = sphi %s877_s13, %s1120_s13   ;;  %s833_s12 = sphi %s875_s12, %s1119_s12  }
   0x8   : > { %p42_p0 = scmp.ne.s32.totalorder %s837_s13, %s833_s12  ;;  %p1101_p1 = scmp.eq.s32.totalorder %s896_s16, 0 }
   0x9   : > { %p119_p3 = scmp.eq.s32.totalorder %s567_s17, 1  ;;  %p568_p5 = scmp.ge.s32.totalorder %s845_s15, 1 }
   0xa   : > { %p905_p4 = por %p1101_p1, %p42_p0  ;;  %p126_p7 = scmp.lt.s32.totalorder %s845_s15, 3 }
   0xb   : > { %p910_p6 = por %p119_p3, %p42_p0  ;;  %s847_s21 = smov [#allocation7]  }
   0xc   : > { %s1105_s18 = scalar_select %p905_p4, 1, 0 }
   0xd   : > { %s1106_s19 = scalar_select %p910_p6, 1, 0 }
   0xe   : > { %p915_p8 = pnand %p568_p5, %p126_p7  ;;  %s138_s22 = sshll.u32 %s847_s21, 4  ;;  %s139_s22 = int_to_ptr.vmem [resolvable:$true] %s138_s22 }
   0xf   : > { %s929_s24 = sadd.s32 1, %s845_s15   ;;  %s29_s25 = sadd.s32 1, %s841_s14 }
  0x10   : > { %s1107_s20 = scalar_select %p915_p8, 1, 0 }
  0x11   : > { %p631_p9 = pneg %p915_p8  ;;  %s26_s26 = ssub.s32 %s845_s15, %s929_s24 }
  0x12   : > { %s702_s27 = scalar_lea.vmem %s139_s22, 2048  ;;  %p710_p5 = scmp.lt.s32.totalorder %s139_s22, %s139_s22 }
  0x13   : > { %p924_p11 = pnand %p631_p9, %p1101_p1  ;;  %p703_p13 = scmp.ne.s32.totalorder %s139_s22, %s702_s27 }
  0x14   : > { %p711_p7 = scmp.lt.s32.totalorder %s702_s27, %s702_s27 }
  0x15   : > { %p693_p12 = pneg %p924_p11 }
  0x16   : > { %p712_p10 = por %p711_p7, %p710_p5 }
  0x17   : > { %p705_p0 = pnand %p703_p13, %p693_p12 }
  0x19   : > { %p706_p3 = pneg %p705_p0 }
  0x1b   : > { %p713_p2 = pnand %p712_p10, %p706_p3 }
  0x1d   : > { %716 = shalt.err (!%p713_p2)
}
  0x1e   : > { %s848_s28 = smov 128   ;;  %s849_s29 = smov 8  }
  0x1f   : > { %634 = dma.hbm_to_vmem [thread:$0]  (!%p924_p11), %s1099_s2, 2048, %s139_s22, [#allocation6], %s848_s28, %s848_s28, %s849_s29  }
  0x20   : > { %p27_p9 = scmp.eq.s32.totalorder %s26_s26, 0  ;;  %p36_p12 = scmp.ne.s32.totalorder %s841_s14, %s837_s13 }
  0x21   : > { %p37_p10 = scmp.eq.s32.totalorder %s845_s15, 0  ;;  %p647_p2 = scmp.lt.s32.totalorder %s845_s15, 2 }
  0x22   : > { %s946_s5 = scalar_select %p27_p9, %s841_s14, %s29_s25  }
  0x23   : > { %p38_p13 = por %p37_p10, %p36_p12  ;;  %p1109_p0 = scmp.eq.s32.totalorder %s896_s16, 1 }
  0x24   : > { %s152_s7 = sand.u32 1, %s841_s14   ;;  %s572_s8 = sshll.u32 %s845_s15, 7 }
  0x25   : > { %p950_p3 = por %p1109_p0, %p36_p12  ;;  %s956_s9 = sshll.u32 %s152_s7, 3 }
  0x26   : > { %s961_s17 = scalar_lea.hbm %s1097_s0, %s572_s8  ;;  %s156_s21 = scalar_lea.vmem [#allocation2], %s956_s9 }
  0x27   : > { %s1110_s6 = scalar_select %p950_p3, 1, 0 }
  0x28   : > { %s163_s22 = sshll.u32 %s156_s21, 4  ;;  %p964_p11 = pnand %p647_p2, %p38_p13  ;;  %s164_s22 = int_to_ptr.vmem [resolvable:$true] %s163_s22 }
  0x29   : > { %s971_s27 = scalar_lea.hbm %s1098_s1, %s572_s8  ;;  %s153_s28 = scalar_lea.sflag [#allocation3], %s152_s7 }
  0x2a   : > { %s717_s29 = scalar_lea.hbm %s961_s17, 128  ;;  %p719_p7 = pneg %p964_p11 }
  0x2b   : > { %p718_p5 = scmp.ne.s32.totalorder %s961_s17, %s717_s29  ;;  %s722_s10 = scalar_lea.hbm %s1097_s0, 256 }
  0x2c   : > { %p723_p10 = scmp.lt.s32.totalorder %s961_s17, %s1097_s0  ;;  %p724_p2 = scmp.lt.s32.totalorder %s722_s10, %s717_s29 }
  0x2d   : > { %p720_p9 = pnand %p719_p7, %p718_p5 }
  0x2e   : > { %p725_p13 = por %p724_p2, %p723_p10 }
  0x2f   : > { %p721_p12 = pneg %p720_p9 }
  0x31   : > { %p726_p0 = pnand %p725_p13, %p721_p12 }
  0x33   : > { %729 = shalt.err (!%p726_p0)
}
  0x34   : > { %s730_s7 = scalar_lea.vmem %s164_s22, 128  ;;  %s850_s8 = smov [#allocation2]  }
  0x35   : > { %p731_p1 = scmp.ne.s32.totalorder %s164_s22, %s730_s7  ;;  %s735_s25 = sshll.u32 %s850_s8, 4  ;;  %s736_s25 = int_to_ptr.vmem [resolvable:$false] %s735_s25 }
  0x36   : > { %s737_s26 = scalar_lea.vmem %s736_s25, 256  ;;  %p738_p9 = scmp.lt.s32.totalorder %s164_s22, %s736_s25 }
  0x37   : > { %p733_p6 = pnand %p731_p1, %p719_p7  ;;  %p739_p3 = scmp.lt.s32.totalorder %s737_s26, %s730_s7 }
  0x39   : > { %p734_p5 = pneg %p733_p6  ;;  %p740_p4 = por %p739_p3, %p738_p9 }
  0x3b   : > { %p741_p8 = pnand %p740_p4, %p734_p5 }
  0x3d   : > { %744 = shalt.err (!%p741_p8)
}
  0x3e   : > { %638 = dma.hbm_to_vmem [thread:$0]  (!%p964_p11), %s961_s17, 128, %s164_s22, %s153_s28  }
  0x3f   : > { %s170_s29 = sand.u32 1, %s845_s15   ;;  %s174_s30 = scalar_lea.vmem [#allocation5], %s956_s9 }
  0x40   : > { %s181_s4 = sshll.u32 %s174_s30, 4  ;;  %s171_s10 = scalar_lea.sflag [#allocation6], %s170_s29  ;;  %s182_s4 = int_to_ptr.vmem [resolvable:$true] %s181_s4 }
  0x41   : > { %s745_s11 = scalar_lea.hbm %s971_s27, 128  ;;  %s750_s8 = scalar_lea.hbm %s1098_s1, 256 }
  0x42   : > { %p746_p1 = scmp.ne.s32.totalorder %s971_s27, %s745_s11  ;;  %p751_p8 = scmp.lt.s32.totalorder %s971_s27, %s1098_s1 }
  0x43   : > { %p752_p3 = scmp.lt.s32.totalorder %s750_s8, %s745_s11 }
  0x44   : > { %p748_p4 = pnand %p746_p1, %p719_p7 }
  0x45   : > { %p753_p12 = por %p752_p3, %p751_p8 }
  0x46   : > { %p749_p6 = pneg %p748_p4 }
  0x48   : > { %p754_p10 = pnand %p753_p12, %p749_p6 }
  0x4a   : > { %757 = shalt.err (!%p754_p10)
}
  0x4b   : > { %s758_s9 = scalar_lea.vmem %s182_s4, 128  ;;  %s851_s17 = smov [#allocation5]  }
  0x4c   : > { %p759_p2 = scmp.ne.s32.totalorder %s182_s4, %s758_s9  ;;  %s763_s22 = sshll.u32 %s851_s17, 4  ;;  %s764_s22 = int_to_ptr.vmem [resolvable:$false] %s763_s22 }
  0x4d   : > { %s765_s28 = scalar_lea.vmem %s764_s22, 256  ;;  %p766_p5 = scmp.lt.s32.totalorder %s182_s4, %s764_s22 }
  0x4e   : > { %p761_p13 = pnand %p759_p2, %p719_p7  ;;  %p767_p9 = scmp.lt.s32.totalorder %s765_s28, %s758_s9 }
  0x50   : > { %p762_p0 = pneg %p761_p13  ;;  %p768_p1 = por %p767_p9, %p766_p5 }
  0x52   : > { %p769_p4 = pnand %p768_p1, %p762_p0 }
  0x54   : > { %772 = shalt.err (!%p769_p4)
}
  0x55   : > { %641 = dma.hbm_to_vmem [thread:$0]  (!%p964_p11), %s971_s27, 128, %s182_s4, %s171_s10  }
  0x56   : > { %p1112_p6 = scmp.ne.s32.totalorder %s1107_s20, 0 }
  0x57   : > { %s1016_s29 = sand.u32 (!%p1112_p6), 1, %s837_s13   ;;  %p1113_p7 = scmp.ne.s32.totalorder (!%p1112_p6), %s1105_s18, 0 }
  0x58   : > { %190 = sbr.rel (%p1112_p6) target bundleno = 830 (0x33e), region = 32  ;;  %s1019_s30 = sshll.u32 (!%p1112_p6), %s1016_s29, 3 }
  0x59   : > { %s193_s11 = scalar_lea.sflag (!%p1112_p6), [#allocation3], %s1016_s29  ;;  %s196_s21 = scalar_lea.vmem (!%p1112_p6), [#allocation2], %s1019_s30 }
  0x5d   : > { %816 = dma.done.wait (%p1113_p7), %s193_s11, 128  }
  0x5e   : > { %818 = vsyncadd (%p1113_p7), %s193_s11, 4294967168  ;;  %s201_s20 = sand.u32 1, %s896_s16   ;;  %s205_s27 = scalar_lea.vmem [#allocation5], %s1019_s30 }
  0x5f   : > { %s202_s23 = scalar_lea.sflag [#allocation6], %s201_s20 }
  0x60   : > { %820 = dma.done.wait (%p1113_p7), %s202_s23, 128  }
  0x61   : > { %822 = vsyncadd (%p1113_p7), %s202_s23, 4294967168  ;;  %p1114_p11 = scmp.eq.s32.totalorder %s896_s16, 0 }
  0x63   : > { %824 = dma.done.wait (%p1114_p11), [#allocation6], 2048   ;;  %p1115_p8 = pmov %p1114_p11 }
  0x64   : > { %v852_v0 = vmov 0.0   ;;  %vm853_vm0 = vmmov 0   ;;  %v253_v1 = vld [vmem:[#allocation7 + $0x70] sm:$0xff]  ;;  %v254_v2 = vld [vmem:[#allocation7 + $0x78] sm:$0xff]  ;;  %v251_v4 = vld [vmem:[#allocation7 + $0x60] sm:$0xff]  ;;  %v410_v35 = vlaneseq  ;;  %vm432_vm6 = vcmask 64512  }
  0x65   : > { %826 = vsyncadd (%p1115_p8), [#allocation6], 4294965248  ;;  %596 = vmatprep.subr.bf16.mxu0 %v852_v0  ;;  %612 = vmatprep.mubr.msk.bf16.mxu0 %vm853_vm0, %v852_v0  ;;  %v264_v3 = vpack.c.bf16 %v254_v2, %v253_v1  ;;  %v252_v5 = vld [vmem:[#allocation7 + $0x68] sm:$0xff]  ;;  %v249_v7 = vld [vmem:[#allocation7 + $0x50] sm:$0xff]  ;;  %s582_s18 = sshll.u32 %s896_s16, 7  ;;  %s236_s4 = scalar_lea.vmem [#allocation8], %s1019_s30 }
  0x66   : > { %616 = vmatprep.subr.mxu1 %v852_v0  ;;  %618 = vmatprep.mubr.msk.f32.mxu1 %vm853_vm0, %v852_v0  ;;  %v263_v6 = vpack.c.bf16 %v252_v5, %v251_v4  ;;  %v250_v8 = vld [vmem:[#allocation7 + $0x58] sm:$0xff]  ;;  %v247_v10 = vld [vmem:[#allocation7 + $0x40] sm:$0xff]  ;;  %v248_v11 = vld [vmem:[#allocation7 + $0x48] sm:$0xff]  ;;  %v411_v36 = vshrl.u32 %v410_v35, 7  ;;  %v421_v45 = vand.u32 127, %v410_v35  ;;  %s465_s10 = sshll.u32 %s236_s4, 4  ;;  %s1058_s25 = scalar_lea.hbm %s1100_s3, %s582_s18  ;;  %s466_s10 = int_to_ptr.vmem [resolvable:$true] %s465_s10 }
  0x67   : > { %597 = vmatpush3.bf16.xpose.msra.mxu0 %v264_v3  ;;  %v262_v9 = vpack.c.bf16 %v250_v8, %v249_v7  ;;  %v261_v12 = vpack.c.bf16 %v248_v11, %v247_v10  ;;  %v245_v13 = vld [vmem:[#allocation7 + $0x30] sm:$0xff]  ;;  %v246_v14 = vld [vmem:[#allocation7 + $0x38] sm:$0xff]  ;;  %v243_v16 = vld [vmem:[#allocation7 + $0x20] sm:$0xff]  ;;  %s452_s26 = scalar_lea.sflag [#allocation4], %s1016_s29  ;;  %s773_s9 = scalar_lea.vmem %s466_s10, 128 }
  0x68   : > { %598 = vmatprep.subr.bf16.mxu0 %v852_v0  ;;  %v260_v15 = vpack.c.bf16 %v246_v14, %v245_v13  ;;  %v244_v17 = vld [vmem:[#allocation7 + $0x28] sm:$0xff]  ;;  %v241_v19 = vld [vmem:[#allocation7 + $0x10] sm:$0xff]  ;;  %v242_v20 = vld [vmem:[#allocation7 + $0x18] sm:$0xff]  ;;  %v412_v37 = vsub.s32 0, %v411_v36  ;;  %vm423_vm1 = vcmp.ne.s32.totalorder %v411_v36, %v421_v45  ;;  %vm424_vm2 = vcmp.lt.s32.totalorder %v411_v36, 4  ;;  %p774_p3 = scmp.ne.s32.totalorder %s466_s10, %s773_s9  ;;  %p1116_p12 = scmp.ne.s32.totalorder %s1110_s6, 0 }
  0x69   : > { %v259_v18 = vpack.c.bf16 %v244_v17, %v243_v16  ;;  %v258_v21 = vpack.c.bf16 %v242_v20, %v241_v19  ;;  %v239_v22 = vld [vmem:[#allocation7] sm:$0xff]  ;;  %v240_v23 = vld [vmem:[#allocation7 + $0x8] sm:$0xff]  ;;  %vm425_vm3 = vmand %vm423_vm1, %vm424_vm2  ;;  %vm426_vm4 = vcmp.lt.s32.totalorder %v421_v45, 4  ;;  %vm422_vm7 = vcmp.eq.s32.totalorder %v411_v36, %v421_v45  ;;  %s854_s16 = smov [#allocation8]  }
  0x6a   : > { %v257_v24 = vpack.c.bf16 %v240_v23, %v239_v22  ;;  %v238_v25 = vld [vmem:[%s196_s21] sm:$0xff]  ;;  %vm427_vm5 = vmand %vm425_vm3, %vm426_vm4  ;;  %v255_v54 = vld [vmem:[%s205_s27] sm:$0xff]  ;;  %p775_p10 = pnand %p774_p3, %p1116_p12  ;;  %s777_s17 = sshll.u32 %s854_s16, 4  ;;  %s778_s17 = int_to_ptr.vmem [resolvable:$false] %s777_s17 }
  0x6b   : > { %v256_v26 = vpack.c.bf16 %v238_v25, %v238_v25  ;;  %v445_v58 = vsub.f32 1.0, %v255_v54  ;;  %s779_s22 = scalar_lea.vmem %s778_s17, 256  ;;  %p780_p13 = scmp.lt.s32.totalorder %s466_s10, %s778_s17 }
  0x6c   : > { %p776_p2 = pneg %p775_p10  ;;  %p781_p0 = scmp.lt.s32.totalorder %s779_s22, %s773_s9 }
  0x6e   : > { %p782_p5 = por %p781_p0, %p780_p13 }
  0x6f   : > { %599 = vmatpush3.bf16.xpose.msra.mxu0 %v263_v6 }
  0x70   : > { %600 = vmatprep.subr.bf16.mxu0 %v852_v0  ;;  %p783_p9 = pnand %p782_p5, %p776_p2 }
  0x77   : > { %601 = vmatpush3.bf16.xpose.msra.mxu0 %v262_v9 }
  0x78   : > { %602 = vmatprep.subr.bf16.mxu0 %v852_v0 }
  0x7f   : > { %603 = vmatpush3.bf16.xpose.msra.mxu0 %v261_v12 }
  0x80   : > { %604 = vmatprep.subr.bf16.mxu0 %v852_v0 }
  0x87   : > { %605 = vmatpush3.bf16.xpose.msra.mxu0 %v260_v15 }
  0x88   : > { %606 = vmatprep.subr.bf16.mxu0 %v852_v0 }
  0x8f   : > { %607 = vmatpush3.bf16.xpose.msra.mxu0 %v259_v18 }
  0x90   : > { %608 = vmatprep.subr.bf16.mxu0 %v852_v0 }
  0x97   : > { %609 = vmatpush3.bf16.xpose.msra.mxu0 %v258_v21 }
  0x98   : > { %610 = vmatprep.subr.bf16.mxu0 %v852_v0 }
  0x9f   : > { %611 = vmatpush3.bf16.xpose.msra.mxu0 %v257_v24 }
  0xa6   : > { %613 = vmatmul.mubr.bf16.vlgmr.msra.gmra.mxu0 %v256_v26 }
 0x166   : > { %v299_v27 = vpop.f32.mrf.mxu0 }
 0x167   : > { %617 = vmatpush3.xpose.msra.mxu1 %v299_v27  ;;  %v375_v28 = vmul.f32 %v299_v27, %v299_v27 }
 0x168   : > { %v614_v29 = vpop.f32.mrf.mxu0 }
 0x169   : > { %376 = vadd.xlane.f32.xlu0 %v375_v28 }
 0x16a   : > { %v302_v30 = vpop.f32.mrf.mxu0  ;;  %619 = vmatmul.mubr.f32.vlgmr.msra.gmra.mxu1 %v299_v27 }
 0x16c   : > { %v615_v31 = vpop.f32.mrf.mxu0 }
 0x1f2   : > { %v377_v32 = vpop.xlane.xlu0 %376 }
 0x1f3   : > { %378 = vxpose.xlu0.b32.start.end [1/1] (short) (narrow) %v377_v32, 8 }
 0x22a   : > { %v371_v33 = vpop.f32.mrf.mxu1 }
 0x22b   : > { %v415_v40 = vmul.f32 2.0, %v371_v33 }
 0x22c   : > { %v620_v34 = vpop.f32.mrf.mxu1 }
 0x26f   : > { %v394_v38 = vpop.trf.xlu0 }
 0x270   : > { %v413_v39 = vrot.slane %v394_v38, %v412_v37 }
 0x272   : > { %v414_v41 = vadd.f32 %v413_v39, %v377_v32 }
 0x274   : > { %v416_v42 = vsub.f32 %v414_v41, %v415_v40 }
 0x276   : > { %v417_v43 = vmax.f32 %v416_v42, 0.0 }
 0x278   : > { %v428_v44 = vadd.f32 1e-10, %v417_v43 }
 0x27a   : > { %687 = vrcp.f32 %v428_v44 }
 0x287   : > { %v688_v46 = vpop.eup %687 }
 0x288   : > { %v431_v47 = vsel %vm427_vm5, %v688_v46, 0.0 }
 0x289   : > { %v433_v48 = vsel %vm432_vm6, %v431_v47, -inf }
 0x28a   : > { %434 = vmax.xlane.f32.xlu1 %v433_v48 }
 0x313   : > { %v435_v49 = vpop.xlane.xlu1 %434 }
 0x314   : > { %v436_v50 = vmax.f32 %v435_v49, 1e-30 }
 0x316   : > { %689 = vrcp.f32 %v436_v50 }
 0x323   : > { %v690_v51 = vpop.eup %689 }
 0x324   : > { %v438_v52 = vmul.f32 %v690_v51, %v431_v47 }
 0x326   : > { %v439_v53 = vsel %vm422_vm7, 1.0, %v438_v52 }
 0x327   : > { %v440_v55 = vmul.f32 0.99, %v439_v53 }
 0x329   : > { %v441_v56 = vsub.f32 1.0, %v440_v55  ;;  %v442_v57 = vmul.f32 %v440_v55, %v440_v55 }
 0x32b   : > { %v444_v59 = vmul.f32 %v441_v56, %v441_v56  ;;  %v443_v60 = vmul.f32 %v442_v57, %v255_v54 }
 0x32d   : > { %v446_v61 = vmul.f32 %v445_v58, %v444_v59 }
 0x32f   : > { %vm447_vm8 = vcmp.ge.f32.partialorder %v443_v60, %v446_v61 }
 0x330   : > { %v580_v62 = vsel %vm447_vm8, 1.0, %v852_v0 }
 0x331   : > { %450 = vst.msk [vmem:[%s236_s4] sm:$0xff] %vm432_vm6, %v580_v62 }
 0x332   : > { %786 = shalt.err (!%p783_p9)
}
 0x333   : > { %s787_s28 = scalar_lea.hbm %s1058_s25, 128  ;;  %s791_s11 = scalar_lea.hbm %s1100_s3, 256 }
 0x334   : > { %p788_p1 = scmp.ne.s32.totalorder %s1058_s25, %s787_s28  ;;  %p792_p7 = scmp.lt.s32.totalorder %s1058_s25, %s1100_s3 }
 0x335   : > { %p793_p11 = scmp.lt.s32.totalorder %s791_s11, %s787_s28 }
 0x336   : > { %p789_p4 = pnand %p788_p1, %p1116_p12 }
 0x337   : > { %p794_p8 = por %p793_p11, %p792_p7 }
 0x338   : > { %p790_p6 = pneg %p789_p4 }
 0x33a   : > { %p795_p3 = pnand %p794_p8, %p790_p6 }
 0x33c   : > { %798 = shalt.err (!%p795_p3)
}
 0x33d   : > { %629 = dma.vmem_to_hbm [thread:$0]  (%p1116_p12), %s466_s10, 128, %s1058_s25, %s452_s26  }
 0x33e PF: > { %s477_s23 = sand.u32 1, %s833_s12   ;;  %p1117_p10 = scmp.ne.s32.totalorder %s1106_s19, 0 }
 0x33f   : > { %p1118_p2 = scmp.ge.s32.totalorder %s845_s15, 2  ;;  %s478_s27 = scalar_lea.sflag [#allocation4], %s477_s23 }
 0x341   : > { %p643_p13 = pnand %p1118_p2, %p1117_p10 }
 0x343   : > { %p644_p0 = pneg %p643_p13 }
 0x345   : > { %828 = dma.done.wait (%p644_p0), %s478_s27, 128  }
 0x346   : > { %830 = vsyncadd (%p644_p0), %s478_s27, 4294967168  ;;  %p19_p5 = scmp.ge.s32.totalorder %s929_s24, 4   ;;  %s1119_s12 = smov %s837_s13 }
 0x347   : > { %s1120_s13 = smov %s841_s14  ;;  %s1121_s14 = smov %s946_s5 }
 0x348   : > { %s1122_s15 = smov %s929_s24  ;;  %21 = sbr.rel (!%p19_p5) target bundleno = 7 (0x7), region = 94 }
 0x34d   :  { %483 = vsyncpa [#allocation3], 1 }
 0x34e   :  { %485 = vsyncpa [#allocation3 + $0x1], 1 }
 0x34f   :  { %486 = vsyncpa [#allocation6], 1 }
 0x350   :  { %488 = vsyncpa [#allocation6 + $0x1], 1 }
 0x351   :  { %489 = vsyncpa [#allocation4], 1 }
 0x352   :  { %491 = vsyncpa [#allocation4 + $0x1], 1 }

</bundles_post_ra>
